<compile_context>
chip_gen: v6e
topology: v6e:2x2x1
jax: 0.10.0
libtpu: 0.0.40
codegen_flags: <defaults>
</compile_context>

<pallas_src>
import functools

import numpy as np
import jax
import jax.numpy as jnp
from jax import lax
from jax.experimental import pallas as pl
from jax.experimental.pallas import tpu as pltpu

_HIDDEN1, _HIDDEN2, _N_OUT, _N_OUT_PAD = 64, 128, 10, 128


def _keep_mask(shape, seed, layer_salt, threshold, row_offset):
    """Deterministic per-element uint32 hash; keep iff hash >= p * 2^32."""
    rows = lax.broadcasted_iota(jnp.int32, shape, 0) + row_offset
    cols = lax.broadcasted_iota(jnp.int32, shape, 1)
    ctr = (rows * shape[1] + cols).astype(jnp.uint32)
    key = seed.astype(jnp.uint32) * np.uint32(0x9E3779B1) + np.uint32(
        (layer_salt * 0x85EBCA77) & 0xFFFFFFFF)
    h = ctr ^ key
    h = h ^ (h >> 16)
    h = h * np.uint32(0x7FEB352D)
    h = h ^ (h >> 15)
    h = h * np.uint32(0x846CA68B)
    h = h ^ (h >> 16)
    return h >= np.uint32(threshold)


def _dropout(h, seed, layer_salt, threshold, scale, row_offset):
    keep = _keep_mask(h.shape, seed, layer_salt, threshold, row_offset)
    return jnp.where(keep, h * jnp.float32(scale), jnp.float32(0.0))


def _mlp_kernel(seed_ref,                                     # SMEM scalar prefetch
                x_ref, w1_ref, b1_ref, w2_ref, b2_ref, w3_ref, b3_ref,
                o_ref,
                *, threshold, scale, use_dropout):
    seed = seed_ref[0]
    row_off = pl.program_id(0) * x_ref.shape[0]   # unique dropout mask per batch tile

    # layer 1: Linear(input_dim, 64) + ReLU (+ dropout)
    h = jnp.dot(x_ref[...].astype(jnp.bfloat16), w1_ref[...],
                preferred_element_type=jnp.float32) + b1_ref[...]
    h = jnp.maximum(h, 0.0)
    if use_dropout:
        h = _dropout(h, seed, 1, threshold, scale, row_off)

    # layer 2: Linear(64, 128) + ReLU (+ dropout)
    h = jnp.dot(h.astype(jnp.bfloat16), w2_ref[...],
                preferred_element_type=jnp.float32) + b2_ref[...]
    h = jnp.maximum(h, 0.0)
    if use_dropout:
        h = _dropout(h, seed, 2, threshold, scale, row_off)

    # layer 3: Linear(128, 10) -- output padded to 128 lanes for dense stores
    out = jnp.dot(h.astype(jnp.bfloat16), w3_ref[...],
                  preferred_element_type=jnp.float32) + b3_ref[...]
    o_ref[...] = out.astype(o_ref.dtype)


def mlp_forward(x, params, *, dropout_rate, seed=0, training=True):
    """x: [B, input_dim] float32. Returns [B, 10] float32."""
    w1, b1, w2, b2, w3, b3 = params
    B, din = x.shape

    p = float(dropout_rate)
    use_dropout = bool(training) and p > 0.0
    if use_dropout and not (0.0 < p < 1.0):
        raise ValueError("dropout_rate must be in [0, 1) in training mode")
    threshold = min(int(p * 4294967296.0), 4294967295)
    scale = 1.0 / (1.0 - p) if use_dropout else 1.0

    # Batch tiling: big tiles amortize the ~0.35us/grid-step overhead; weights
    # are tiny (~50 KB bf16) so VMEM is dominated by the x/out double buffers
    # (TILE_B=512: 2*(512*32*4) + 2*(512*128*4) ~ 0.8 MiB), well inside the
    # 32 MiB default scoped limit on v7x/v6e/v5e.
    TILE_B = 512 if B >= 512 else -(-B // 8) * 8
    B_pad = -(-B // TILE_B) * TILE_B
    x_pad = jnp.pad(x, ((0, B_pad - B), (0, 0))) if B_pad != B else x

    # bf16 weights for the MXU (f32 biases for the f32 accumulators);
    # zero-pad layer-3 outputs 10 -> 128 for lane-dense stores.
    w1b = w1.astype(jnp.bfloat16)
    w2b = w2.astype(jnp.bfloat16)
    w3b = jnp.zeros((_HIDDEN2, _N_OUT_PAD), jnp.bfloat16).at[:, :_N_OUT].set(
        w3.astype(jnp.bfloat16))
    b3p = jnp.zeros((1, _N_OUT_PAD), jnp.float32).at[:, :_N_OUT].set(b3)

    kernel = functools.partial(_mlp_kernel, threshold=threshold, scale=scale,
                               use_dropout=use_dropout)

    # Weights/biases: full-array block at constant index -> stay resident in VMEM.
    resident = lambda a: pl.BlockSpec(a.shape, lambda i, s: (0, 0))

    out = pl.pallas_call(
        kernel,
        out_shape=jax.ShapeDtypeStruct((B_pad, _N_OUT_PAD), jnp.float32),
        grid_spec=pltpu.PrefetchScalarGridSpec(
            num_scalar_prefetch=1,                 # dropout seed -> SMEM
            grid=(B_pad // TILE_B,),
            in_specs=[
                pl.BlockSpec((TILE_B, din), lambda i, s: (i, 0)),
                resident(w1b), resident(b1),
                resident(w2b), resident(b2),
                resident(w3b), resident(b3p),
            ],
            out_specs=pl.BlockSpec((TILE_B, _N_OUT_PAD), lambda i, s: (i, 0)),
        ),
        compiler_params=pltpu.CompilerParams(
            dimension_semantics=("parallel",)),
    )(jnp.array([seed], dtype=jnp.int32), x_pad, w1b, b1, w2b, b2, w3b, b3p)

    return out[:B, :_N_OUT]


def init_params(key, input_dim):
    """Deterministic init mirroring torch.nn.Linear's default uniform bounds."""
    def linear(k, fan_in, fan_out):
        kw, kb = jax.random.split(k)
        bound = 1.0 / (fan_in ** 0.5)
        w = jax.random.uniform(kw, (fan_in, fan_out), jnp.float32, -bound, bound)
        b = jax.random.uniform(kb, (1, fan_out), jnp.float32, -bound, bound)
        return w, b

    k1, k2, k3 = jax.random.split(key, 3)
    w1, b1 = linear(k1, input_dim, _HIDDEN1)
    w2, b2 = linear(k2, _HIDDEN1, _HIDDEN2)
    w3, b3 = linear(k3, _HIDDEN2, _N_OUT)
    return (w1, b1, w2, b2, w3, b3)


if __name__ == "__main__":
    key = jax.random.PRNGKey(0)
    kx, kp = jax.random.split(key)

    B, input_dim = 8, 32
    dropout_rate = 0.5

    x = jax.random.normal(kx, (B, input_dim), jnp.float32)
    params = init_params(kp, input_dim)

    # eval-mode forward (dropout disabled, matches model.eval())
    y_eval = mlp_forward(x, params, dropout_rate=dropout_rate,
                         seed=0, training=False)
    # train-mode forward (dropout active, deterministic in-kernel hash PRNG)
    # TODO(synk): mask distribution matches torch.nn.Dropout, but not its exact
    # RNG bitstream (not reproducible across frameworks).
    y_train = mlp_forward(x, params, dropout_rate=dropout_rate,
                          seed=1234, training=True)

    jax.block_until_ready((y_eval, y_train))
    assert y_eval.shape == (B, 10) and y_train.shape == (B, 10)

    # Loose sanity check vs. a pure-JAX f32 reference (kernel uses bf16 MXU
    # operands, so only gross wiring errors would exceed this bound).
    w1, b1, w2, b2, w3, b3 = params
    ref = jnp.maximum(x @ w1 + b1, 0.0)
    ref = jnp.maximum(ref @ w2 + b2, 0.0)
    ref = ref @ w3 + b3
    assert float(jnp.max(jnp.abs(y_eval - ref))) < 0.5

    print("KERNEL_OK")
</pallas_src>

<mosaic_0001>
module attributes {stable_mosaic.version = 11 : i64} {
  func.func @_mlp_kernel(%arg0: i32, %arg1: memref<1xi32, #tpu.memory_space<smem>>, %arg2: memref<8x32xf32, #tpu.memory_space<vmem>>, %arg3: memref<32x64xbf16, #tpu.memory_space<vmem>>, %arg4: memref<1x64xf32, #tpu.memory_space<vmem>>, %arg5: memref<64x128xbf16, #tpu.memory_space<vmem>>, %arg6: memref<1x128xf32, #tpu.memory_space<vmem>>, %arg7: memref<128x128xbf16, #tpu.memory_space<vmem>>, %arg8: memref<1x128xf32, #tpu.memory_space<vmem>>, %arg9: memref<8x128xf32, #tpu.memory_space<vmem>>) attributes {dimension_semantics = [#tpu.dimension_semantics<parallel>], iteration_bounds = array<i64: 1>, scalar_prefetch = 1 : i64, scratch_operands = 0 : i64, tpu.core_type = #tpu.core_type<tc>, window_params = [{transform_indices = @transform_0, window_bounds = array<i64: 8, 32>}, {pipeline_mode = #tpu.pipeline_mode<synchronous>, transform_indices = @transform_1, window_bounds = array<i64: 32, 64>}, {pipeline_mode = #tpu.pipeline_mode<synchronous>, transform_indices = @transform_2, window_bounds = array<i64: 1, 64>}, {pipeline_mode = #tpu.pipeline_mode<synchronous>, transform_indices = @transform_3, window_bounds = array<i64: 64, 128>}, {pipeline_mode = #tpu.pipeline_mode<synchronous>, transform_indices = @transform_4, window_bounds = array<i64: 1, 128>}, {pipeline_mode = #tpu.pipeline_mode<synchronous>, transform_indices = @transform_5, window_bounds = array<i64: 128, 128>}, {pipeline_mode = #tpu.pipeline_mode<synchronous>, transform_indices = @transform_6, window_bounds = array<i64: 1, 128>}, {transform_indices = @transform_7, window_bounds = array<i64: 8, 128>}]} {
    %c0 = arith.constant 0 : index
    %c0_0 = arith.constant 0 : index
    %0 = vector.load %arg2[%c0, %c0_0] : memref<8x32xf32, #tpu.memory_space<vmem>>, vector<8x32xf32>
    %1 = arith.truncf %0 : vector<8x32xf32> to vector<8x32xbf16>
    %c0_1 = arith.constant 0 : index
    %c0_2 = arith.constant 0 : index
    %2 = vector.load %arg3[%c0_1, %c0_2] : memref<32x64xbf16, #tpu.memory_space<vmem>>, vector<32x64xbf16>
    %cst = arith.constant dense<0.000000e+00> : vector<8x64xf32>
    %3 = tpu.matmul %1, %2, %cst {dimension_numbers = #tpu.dot_dimension_numbers<[1], [0], [0], [1], [0, 0, 1, 1], [], []>} : vector<8x32xbf16>, vector<32x64xbf16>, vector<8x64xf32> -> vector<8x64xf32>
    %c0_3 = arith.constant 0 : index
    %c0_4 = arith.constant 0 : index
    %4 = vector.load %arg4[%c0_3, %c0_4] : memref<1x64xf32, #tpu.memory_space<vmem>>, vector<1x64xf32>
    %5 = vector.broadcast %4 : vector<1x64xf32> to vector<8x64xf32>
    %6 = arith.addf %3, %5 : vector<8x64xf32>
    %cst_5 = arith.constant 0.000000e+00 : f32
    %7 = vector.broadcast %cst_5 : f32 to vector<8x64xf32>
    %8 = arith.maximumf %6, %7 : vector<8x64xf32>
    %9 = arith.truncf %8 : vector<8x64xf32> to vector<8x64xbf16>
    %c0_6 = arith.constant 0 : index
    %c0_7 = arith.constant 0 : index
    %10 = vector.load %arg5[%c0_6, %c0_7] : memref<64x128xbf16, #tpu.memory_space<vmem>>, vector<64x128xbf16>
    %cst_8 = arith.constant dense<0.000000e+00> : vector<8x128xf32>
    %11 = tpu.matmul %9, %10, %cst_8 {dimension_numbers = #tpu.dot_dimension_numbers<[1], [0], [0], [1], [0, 0, 1, 1], [], []>} : vector<8x64xbf16>, vector<64x128xbf16>, vector<8x128xf32> -> vector<8x128xf32>
    %c0_9 = arith.constant 0 : index
    %c0_10 = arith.constant 0 : index
    %12 = vector.load %arg6[%c0_9, %c0_10] : memref<1x128xf32, #tpu.memory_space<vmem>>, vector<1x128xf32>
    %13 = vector.broadcast %12 : vector<1x128xf32> to vector<8x128xf32>
    %14 = arith.addf %11, %13 : vector<8x128xf32>
    %cst_11 = arith.constant 0.000000e+00 : f32
    %15 = vector.broadcast %cst_11 : f32 to vector<8x128xf32>
    %16 = arith.maximumf %14, %15 : vector<8x128xf32>
    %17 = arith.truncf %16 : vector<8x128xf32> to vector<8x128xbf16>
    %c0_12 = arith.constant 0 : index
    %c0_13 = arith.constant 0 : index
    %18 = vector.load %arg7[%c0_12, %c0_13] : memref<128x128xbf16, #tpu.memory_space<vmem>>, vector<128x128xbf16>
    %cst_14 = arith.constant dense<0.000000e+00> : vector<8x128xf32>
    %19 = tpu.matmul %17, %18, %cst_14 {dimension_numbers = #tpu.dot_dimension_numbers<[1], [0], [0], [1], [0, 0, 1, 1], [], []>} : vector<8x128xbf16>, vector<128x128xbf16>, vector<8x128xf32> -> vector<8x128xf32>
    %c0_15 = arith.constant 0 : index
    %c0_16 = arith.constant 0 : index
    %20 = vector.load %arg8[%c0_15, %c0_16] : memref<1x128xf32, #tpu.memory_space<vmem>>, vector<1x128xf32>
    %21 = vector.broadcast %20 : vector<1x128xf32> to vector<8x128xf32>
    %22 = arith.addf %19, %21 : vector<8x128xf32>
    %c0_17 = arith.constant 0 : index
    %c0_18 = arith.constant 0 : index
    %23 = vector.load %arg9[%c0_17, %c0_18] : memref<8x128xf32, #tpu.memory_space<vmem>>, vector<8x128xf32>
    tpu.vector_store %arg9[%c0_17, %c0_18], %22 {strides = array<i32>} : memref<8x128xf32, #tpu.memory_space<vmem>>, vector<8x128xf32>,
    return
  }
  func.func @transform_0(%arg0: i32, %arg1: memref<1xi32, #tpu.memory_space<smem>>) -> (i32, i32) {
    %c0_i32 = arith.constant 0 : i32
    %c0_i32_0 = arith.constant 0 : i32
    return %arg0, %c0_i32 : i32, i32
  }
  func.func @transform_1(%arg0: i32, %arg1: memref<1xi32, #tpu.memory_space<smem>>) -> (i32, i32) {
    %c0_i32 = arith.constant 0 : i32
    %c0_i32_0 = arith.constant 0 : i32
    %c0_i32_1 = arith.constant 0 : i32
    return %c0_i32, %c0_i32_0 : i32, i32
  }
  func.func @transform_2(%arg0: i32, %arg1: memref<1xi32, #tpu.memory_space<smem>>) -> (i32, i32) {
    %c0_i32 = arith.constant 0 : i32
    %c0_i32_0 = arith.constant 0 : i32
    %c0_i32_1 = arith.constant 0 : i32
    return %c0_i32, %c0_i32_0 : i32, i32
  }
  func.func @transform_3(%arg0: i32, %arg1: memref<1xi32, #tpu.memory_space<smem>>) -> (i32, i32) {
    %c0_i32 = arith.constant 0 : i32
    %c0_i32_0 = arith.constant 0 : i32
    %c0_i32_1 = arith.constant 0 : i32
    return %c0_i32, %c0_i32_0 : i32, i32
  }
  func.func @transform_4(%arg0: i32, %arg1: memref<1xi32, #tpu.memory_space<smem>>) -> (i32, i32) {
    %c0_i32 = arith.constant 0 : i32
    %c0_i32_0 = arith.constant 0 : i32
    %c0_i32_1 = arith.constant 0 : i32
    return %c0_i32, %c0_i32_0 : i32, i32
  }
  func.func @transform_5(%arg0: i32, %arg1: memref<1xi32, #tpu.memory_space<smem>>) -> (i32, i32) {
    %c0_i32 = arith.constant 0 : i32
    %c0_i32_0 = arith.constant 0 : i32
    %c0_i32_1 = arith.constant 0 : i32
    return %c0_i32, %c0_i32_0 : i32, i32
  }
  func.func @transform_6(%arg0: i32, %arg1: memref<1xi32, #tpu.memory_space<smem>>) -> (i32, i32) {
    %c0_i32 = arith.constant 0 : i32
    %c0_i32_0 = arith.constant 0 : i32
    %c0_i32_1 = arith.constant 0 : i32
    return %c0_i32, %c0_i32_0 : i32, i32
  }
  func.func @transform_7(%arg0: i32, %arg1: memref<1xi32, #tpu.memory_space<smem>>) -> (i32, i32) {
    %c0_i32 = arith.constant 0 : i32
    %c0_i32_0 = arith.constant 0 : i32
    return %arg0, %c0_i32 : i32, i32
  }
}

</mosaic_0001>

<bundles_post_ra>
// kernel: tpu_custom_call.1
= control target key start
LH: loop header
LB: loop body
LE: loop exit
PB: predicated region body
PF: predicated region fallthrough
CT: control target
= control target key end

     0   :  { %14 = vsyncpa [#allocation5], 0  ;;  %s665_s0 = inlined_call_operand.<no memory space> [shape: s32[1], index: 0, kind: input, shape index: {}]   ;;  %s666_s1 = inlined_call_operand.hbm [shape: f32[8,32], index: 1, kind: input, shape index: {}]   ;;  %s667_s2 = inlined_call_operand.hbm [shape: bf16[32,64], index: 2, kind: input, shape index: {}]   ;;  %s668_s3 = inlined_call_operand.vmem [shape: f32[1,64], index: 3, kind: input, shape index: {}]   ;;  %s669_s4 = inlined_call_operand.hbm [shape: bf16[64,128], index: 4, kind: input, shape index: {}]   ;;  %s670_s5 = inlined_call_operand.vmem [shape: f32[1,128], index: 5, kind: input, shape index: {}]   ;;  %s671_s6 = inlined_call_operand.hbm [shape: bf16[128,128], index: 6, kind: input, shape index: {}]   ;;  %s672_s7 = inlined_call_operand.vmem [shape: f32[1,128], index: 7, kind: input, shape index: {}]   ;;  %s673_s8 = inlined_call_operand.hbm [shape: f32[8,128], index: 8, kind: output, shape index: {}]  }
   0x1   :  { %15 = vsyncpa [#allocation8], 0 }
   0x2   :  { %16 = vsyncpa [#allocation11], 0 }
   0x3   :  { %17 = vsyncpa [#allocation6], 0  ;;  %s575_s26 = smov [#allocation7]  }
   0x4   :  { %s33_s27 = sshll.u32 %s575_s26, 4  ;;  %s34_s27 = int_to_ptr.vmem [resolvable:$true] %s33_s27 }
   0x5   :  { %s475_s28 = scalar_lea.vmem %s34_s27, 256  ;;  %p480_p1 = scmp.lt.s32.totalorder %s34_s27, %s34_s27 }
   0x6   :  { %p476_p0 = scmp.ne.s32.totalorder %s34_s27, %s475_s28  ;;  %p481_p2 = scmp.lt.s32.totalorder %s475_s28, %s475_s28 }
   0x8   :  { %p482_p3 = por %p481_p2, %p480_p1 }
   0xa   :  { %p483_p4 = pnand %p482_p3, %p476_p0 }
   0xc   :  { %486 = shalt.err (!%p483_p4)
}
   0xd   :  { %s576_s29 = smov 64   ;;  %s577_s30 = smov 4  }
   0xe   :  { %39 = dma.hbm_to_vmem [thread:$0]  %s667_s2, 256, %s34_s27, [#allocation8], %s576_s29, %s576_s29, %s577_s30  }
   0xf   :  { %s578_s11 = smov [#allocation4]   ;;  %s579_s13 = smov [#allocation9]  }
  0x10   :  { %s24_s12 = sshll.u32 %s578_s11, 4  ;;  %s47_s14 = sshll.u32 %s579_s13, 4  ;;  %s25_s12 = int_to_ptr.vmem [resolvable:$true] %s24_s12  ;;  %s48_s14 = int_to_ptr.vmem [resolvable:$true] %s47_s14 }
  0x11   :  { %s495_s15 = scalar_lea.vmem %s25_s12, 128  ;;  %p500_p6 = scmp.lt.s32.totalorder %s25_s12, %s25_s12 }
  0x12   :  { %p496_p5 = scmp.ne.s32.totalorder %s25_s12, %s495_s15  ;;  %p501_p7 = scmp.lt.s32.totalorder %s495_s15, %s495_s15 }
  0x14   :  { %p502_p8 = por %p501_p7, %p500_p6 }
  0x16   :  { %p503_p9 = pnand %p502_p8, %p496_p5 }
  0x18   :  { %506 = shalt.err (!%p503_p9)
}
  0x19   :  { %27 = dma.hbm_to_vmem [thread:$0]  %s666_s1, 128, %s25_s12, [#allocation5]  }
  0x1a   :  { %s515_s18 = scalar_lea.vmem %s48_s14, 512  ;;  %p520_p11 = scmp.lt.s32.totalorder %s48_s14, %s48_s14 }
  0x1b   :  { %p516_p10 = scmp.ne.s32.totalorder %s48_s14, %s515_s18  ;;  %p521_p12 = scmp.lt.s32.totalorder %s515_s18, %s515_s18 }
  0x1d   :  { %p522_p13 = por %p521_p12, %p520_p11 }
  0x1f   :  { %p523_p0 = pnand %p522_p13, %p516_p10 }
  0x21   :  { %526 = shalt.err (!%p523_p0)
}
  0x22   :  { %53 = dma.hbm_to_vmem [thread:$0]  %s669_s4, 512, %s48_s14, [#allocation8], %s576_s29, %s576_s29, %s577_s30  }
  0x23   :  { %s580_s20 = smov [#allocation10]  }
  0x24   :  { %s61_s21 = sshll.u32 %s580_s20, 4  ;;  %s62_s21 = int_to_ptr.vmem [resolvable:$true] %s61_s21 }
  0x25   :  { %s535_s22 = scalar_lea.vmem %s62_s21, 1024  ;;  %p540_p2 = scmp.lt.s32.totalorder %s62_s21, %s62_s21 }
  0x26   :  { %p536_p1 = scmp.ne.s32.totalorder %s62_s21, %s535_s22  ;;  %p541_p3 = scmp.lt.s32.totalorder %s535_s22, %s535_s22 }
  0x28   :  { %p542_p4 = por %p541_p3, %p540_p2 }
  0x2a   :  { %p543_p5 = pnand %p542_p4, %p536_p1 }
  0x2c   :  { %546 = shalt.err (!%p543_p5)
}
  0x2d   :  { %67 = dma.hbm_to_vmem [thread:$0]  %s671_s6, 1024, %s62_s21, [#allocation11], %s576_s29, %s576_s29, %s577_s30  }
  0x2e   :  { %567 = dma.done.wait [#allocation5], 128  }
  0x2f   :  { %568 = vsyncadd [#allocation5], 4294967168 }
  0x30   :  { %569 = dma.done.wait [#allocation8], 768  }
  0x31   :  { %570 = vsyncadd [#allocation8], 4294966528 }
  0x32   :  { %571 = dma.done.wait [#allocation11], 1024  }
  0x33   :  { %572 = vsyncadd [#allocation11], 4294966272  ;;  %v581_v0 = vmov 0.0   ;;  %vm582_vm0 = vmmov 0   ;;  %v453_v1 = vld [vmem:[#allocation7 + $0x8] sm:$0xff]   ;;  %v454_v2 = vld [vmem:[#allocation7] sm:$0xff]  }
  0x34   :  { %404 = vmatprep.subr.bf16.mxu1 %v581_v0  ;;  %408 = vmatprep.mubr.msk.bf16.mxu1 %vm582_vm0, %v581_v0  ;;  %v83_v3 = vld [vmem:[#allocation4] sm:$0xff]  ;;  %vm108_vm1 = vcmask 261120   ;;  %v455_v4 = vld [vmem:[#allocation9 + $0x18] sm:$0xff]   ;;  %v456_v6 = vld [vmem:[#allocation9 + $0x10] sm:$0xff]   ;;  %vm193_vm2 = vcmask 523264   ;;  %s583_s26 = smov [#allocation12]  }
  0x35   :  { %424 = vmatprep.subr.bf16.mxu0 %v581_v0  ;;  %440 = vmatprep.mubr.msk.bf16.mxu0 %vm582_vm0, %v581_v0  ;;  %v84_v5 = vpack.c.bf16 %v83_v3, %v83_v3  ;;  %v457_v7 = vld [vmem:[#allocation9 + $0x8] sm:$0xff]   ;;  %v458_v8 = vld [vmem:[#allocation9] sm:$0xff]   ;;  %v459_v9 = vld [vmem:[#allocation10 + $0x38] sm:$0xff]   ;;  %s357_s27 = sshll.u32 %s583_s26, 4  ;;  %s358_s27 = int_to_ptr.vmem [resolvable:$true] %s357_s27 }
  0x36   :  { %405 = vmatpush3.bf16.msra.mxu1 %v453_v1  ;;  %425 = vmatpush3.bf16.msra.mxu0 %v459_v9  ;;  %v460_v10 = vld [vmem:[#allocation10 + $0x30] sm:$0xff]   ;;  %v461_v11 = vld [vmem:[#allocation10 + $0x28] sm:$0xff]   ;;  %v462_v12 = vld [vmem:[#allocation10 + $0x20] sm:$0xff]   ;;  %p552_p7 = scmp.lt.s32.totalorder %s358_s27, %s358_s27 }
  0x37   :  { %406 = vmatprep.subr.bf16.mxu1 %v581_v0  ;;  %426 = vmatprep.subr.bf16.mxu0 %v581_v0  ;;  %v463_v13 = vld [vmem:[#allocation10 + $0x18] sm:$0xff]   ;;  %v464_v14 = vld [vmem:[#allocation10 + $0x10] sm:$0xff]   ;;  %v368_v15 = vld [vmem:[%s668_s3] ss:$0 sm:$0xff] }
  0x38   :  { %v465_v23 = vld [vmem:[#allocation10 + $0x8] sm:$0xff]   ;;  %v466_v24 = vld [vmem:[#allocation10] sm:$0xff]  }
  0x39   :  { %v372_v25 = vld [vmem:[%s670_s5] ss:$0 sm:$0xff]  ;;  %s547_s5 = scalar_lea.vmem %s358_s27, 128 }
  0x3a   :  { %407 = vmatpush3.bf16.msra.mxu1 %v454_v2  ;;  %427 = vmatpush3.bf16.msra.mxu0 %v460_v10  ;;  %v378_v33 = vld [vmem:[%s672_s7] ss:$0 sm:$0xff]  ;;  %p548_p6 = scmp.ne.s32.totalorder %s358_s27, %s547_s5  ;;  %p553_p8 = scmp.lt.s32.totalorder %s547_s5, %s547_s5 }
  0x3b   :  { %412 = vmatprep.subr.bf16.mxu1 %v581_v0  ;;  %428 = vmatprep.subr.bf16.mxu0 %v581_v0 }
  0x3c   :  { %p554_p9 = por %p553_p8, %p552_p7 }
  0x3d   :  { %409 = vmatmul.mubr.msk.bf16.vlgmr.msra.gmra.mxu1 %vm108_vm1, %v84_v5 }
  0x3e   :  { %413 = vmatpush3.bf16.msra.mxu1 %v455_v4  ;;  %420 = vmatprep.mubr.msk.bf16.mxu1 %vm582_vm0, %v581_v0  ;;  %p555_p10 = pnand %p554_p9, %p548_p6 }
  0x3f   :  { %414 = vmatprep.subr.bf16.mxu1 %v581_v0  ;;  %429 = vmatpush3.bf16.msra.mxu0 %v461_v11 }
  0x40   :  { %430 = vmatprep.subr.bf16.mxu0 %v581_v0 }
  0x42   :  { %415 = vmatpush3.bf16.msra.mxu1 %v456_v6 }
  0x43   :  { %416 = vmatprep.subr.bf16.mxu1 %v581_v0  ;;  %431 = vmatpush3.bf16.msra.mxu0 %v462_v12 }
  0x44   :  { %432 = vmatprep.subr.bf16.mxu0 %v581_v0 }
  0x46   :  { %417 = vmatpush3.bf16.msra.mxu1 %v457_v7 }
  0x47   :  { %418 = vmatprep.subr.bf16.mxu1 %v581_v0  ;;  %433 = vmatpush3.bf16.msra.mxu0 %v463_v13 }
  0x48   :  { %434 = vmatprep.subr.bf16.mxu0 %v581_v0 }
  0x4a   :  { %419 = vmatpush3.bf16.msra.mxu1 %v458_v8 }
  0x4b   :  { %435 = vmatpush3.bf16.msra.mxu0 %v464_v14 }
  0x4c   :  { %436 = vmatprep.subr.bf16.mxu0 %v581_v0 }
  0x4f   :  { %437 = vmatpush3.bf16.msra.mxu0 %v465_v23 }
  0x50   :  { %438 = vmatprep.subr.bf16.mxu0 %v581_v0 }
  0x53   :  { %439 = vmatpush3.bf16.msra.mxu0 %v466_v24 }
  0xfd   :  { %v146_v16 = vpop.f32.mrf.mxu1 }
  0xfe   :  { %v147_v17 = vadd.f32 %v368_v15, %v146_v16 }
  0xff   :  { %v410_v18 = vpop.f32.mrf.mxu1 }
 0x100   :  { %v152_v19 = vmax.f32 %v147_v17, 0.0 }
 0x101   :  { %v149_v20 = vpop.f32.mrf.mxu1 }
 0x102   :  { %v153_v21 = vpack.c.bf16 %v152_v19, %v152_v19 }
 0x103   :  { %v411_v22 = vpop.f32.mrf.mxu1 }
 0x104   :  { %421 = vmatmul.mubr.msk.bf16.vlgmr.msra.gmra.mxu1 %vm193_vm2, %v153_v21 }
 0x1c4   :  { %v231_v26 = vpop.f32.mrf.mxu1 }
 0x1c5   :  { %v232_v27 = vadd.f32 %v372_v25, %v231_v26 }
 0x1c6   :  { %v422_v28 = vpop.f32.mrf.mxu1 }
 0x1c7   :  { %v237_v29 = vmax.f32 %v232_v27, 0.0 }
 0x1c8   :  { %v234_v30 = vpop.f32.mrf.mxu1 }
 0x1c9   :  { %v238_v31 = vpack.c.bf16 %v237_v29, %v237_v29 }
 0x1ca   :  { %v423_v32 = vpop.f32.mrf.mxu1 }
 0x1cb   :  { %441 = vmatmul.mubr.bf16.vlgmr.msra.gmra.mxu0 %v238_v31 }
 0x28b   :  { %v344_v34 = vpop.f32.mrf.mxu0 }
 0x28c   :  { %v345_v35 = vadd.f32 %v378_v33, %v344_v34 }
 0x28d   :  { %v442_v36 = vpop.f32.mrf.mxu0 }
 0x28e   :  { %350 = vst [vmem:[#allocation12] sm:$0xff] %v345_v35 }
 0x28f   :  { %v347_v37 = vpop.f32.mrf.mxu0 }
 0x290   :  { %558 = shalt.err (!%p555_p10)
}
 0x291   :  { %360 = dma.vmem_to_hbm [thread:$0]  %s358_s27, 128, %s673_s8, [#allocation6]   ;;  %v443_v38 = vpop.f32.mrf.mxu0 }
 0x292   :  { %573 = dma.done.wait [#allocation6], 128  }
 0x293   :  { %574 = vsyncadd [#allocation6], 4294967168 }
 0x294   :  { %364 = vsyncpa [#allocation5], 1 }
 0x295   :  { %365 = vsyncpa [#allocation8], 1 }
 0x296   :  { %366 = vsyncpa [#allocation11], 1 }
 0x297   :  { %367 = vsyncpa [#allocation6], 1 }

</bundles_post_ra>
